<compile_context>
chip_gen: v7x
topology: tpu7x:2x2x1
jax: 0.10.0
libtpu: 0.0.40
codegen_flags: <defaults>
</compile_context>

<pallas_src>
import math

import jax
import jax.numpy as jnp
from jax.experimental import pallas as pl
from jax.experimental.pallas import tpu as pltpu


def _round_up(x: int, m: int) -> int:
    return ((x + m - 1) // m) * m


# ---------------------------------------------------------------------------
# Weight-resident kernel: grid = (M_tiles,), full-K dot per M tile.
# ---------------------------------------------------------------------------
def _resident_kernel(x_ref, w_ref, b_ref, o_ref):
    # x: (tm, K)  w: (K, N) resident  b: (1, N) resident  o: (tm, N)
    y = jnp.dot(x_ref[...], w_ref[...], preferred_element_type=jnp.float32)
    o_ref[...] = (y + b_ref[...]).astype(o_ref.dtype)


# ---------------------------------------------------------------------------
# Tiled fallback kernels: grid = (M_tiles, N_tiles, K_tiles), K innermost.
# ---------------------------------------------------------------------------
def _tiled_kernel_f32(x_ref, w_ref, b_ref, o_ref):
    # f32 output: accumulate directly into the resident output block
    # (saves the tm*tn*4B scratch and the finalize copy).
    @pl.when(pl.program_id(2) == 0)
    def _():
        o_ref[...] = jnp.broadcast_to(b_ref[...].astype(o_ref.dtype), o_ref.shape)

    o_ref[...] += jnp.dot(x_ref[...], w_ref[...],
                          preferred_element_type=jnp.float32)


def _tiled_kernel_acc(x_ref, w_ref, b_ref, o_ref, acc_ref):
    # Narrow output dtype: keep an f32 accumulator scratch.
    @pl.when(pl.program_id(2) == 0)
    def _():
        acc_ref[...] = jnp.broadcast_to(b_ref[...].astype(jnp.float32), acc_ref.shape)

    acc_ref[...] += jnp.dot(x_ref[...], w_ref[...],
                            preferred_element_type=jnp.float32)

    @pl.when(pl.program_id(2) == pl.num_programs(2) - 1)
    def _():
        o_ref[...] = acc_ref[...].astype(o_ref.dtype)


# Conservative: well under the 32 MiB default scoped VMEM on v6e/v7x (and we
# raise vmem_limit_bytes explicitly anyway for v5e's 16 MiB default).
_RESIDENT_VMEM_BUDGET = 20 * 1024 * 1024


def pallas_linear(x2d: jax.Array, weight: jax.Array, bias: jax.Array, *,
                  tile_m: int = 1024, tile_n: int = 1024, tile_k: int = 512,
                  compute_dtype=None) -> jax.Array:
    """y = x2d @ weight.T + bias.   x2d: (M, K); weight: (N, K); bias: (N,)."""
    M, K = x2d.shape
    N, K2 = weight.shape
    assert K == K2, (K, K2)
    out_dtype = x2d.dtype

    # One-time wrapper transpose (constant-folded / amortized for static weights):
    # kernel contracts with the standard K-major layout, no per-tile vxpose.
    w_t = weight.T                     # (K, N)
    b2d = bias.reshape(1, N)

    if compute_dtype is not None:      # optional bf16 operands, f32 accumulate
        x2d = x2d.astype(compute_dtype)
        w_t = w_t.astype(compute_dtype)

    in_bytes = jnp.dtype(x2d.dtype).itemsize
    out_bytes = jnp.dtype(out_dtype).itemsize
    bias_bytes = jnp.dtype(b2d.dtype).itemsize

    # -------------------- weight-resident path --------------------
    if M <= tile_m:
        # Guarantee >=2 parallel blocks when cheaply possible (v7x has 2 TCs).
        res_tm = M // 2 if (M >= 16 and M % 16 == 0) else M
        res_Mp = M
    else:
        res_tm = tile_m                            # multiple of 8
        res_Mp = _round_up(M, res_tm)

    resident_bytes = (K * N * in_bytes + N * bias_bytes
                      + 2 * res_tm * K * in_bytes        # double-buffered x tile
                      + 2 * res_tm * N * out_bytes)      # double-buffered out tile

    if resident_bytes <= _RESIDENT_VMEM_BUDGET:
        x_p = x2d if res_Mp == M else jnp.pad(x2d, ((0, res_Mp - M), (0, 0)))
        grid_m = res_Mp // res_tm
        bytes_accessed = (res_Mp * K * in_bytes + K * N * in_bytes
                          + res_Mp * N * out_bytes + N * bias_bytes)
        out_p = pl.pallas_call(
            _resident_kernel,
            out_shape=jax.ShapeDtypeStruct((res_Mp, N), out_dtype),
            grid_spec=pltpu.PrefetchScalarGridSpec(
                num_scalar_prefetch=0,
                grid=(grid_m,),
                in_specs=[
                    pl.BlockSpec((res_tm, K), lambda i: (i, 0)),   # x: stream M tiles
                    pl.BlockSpec((K, N), lambda i: (0, 0)),        # weight: resident
                    pl.BlockSpec((1, N), lambda i: (0, 0)),        # bias: resident
                ],
                out_specs=pl.BlockSpec((res_tm, N), lambda i: (i, 0)),
            ),
            compiler_params=pltpu.CompilerParams(
                dimension_semantics=("parallel",),
                vmem_limit_bytes=min(48 * 1024 * 1024,
                                     max(32 * 1024 * 1024, 2 * resident_bytes))),
            cost_estimate=pl.CostEstimate(
                flops=2 * res_Mp * N * K,
                bytes_accessed=bytes_accessed,
                transcendentals=0),
        )(x_p, w_t, b2d)
        return out_p[:M] if res_Mp != M else out_p

    # -------------------- tiled fallback (weight too big for VMEM) --------------------
    tm = min(tile_m, _round_up(M, 8))
    tn = min(tile_n, _round_up(N, 256))   # keep 256-multiples for the 256x256 MXU
    tk = min(tile_k, _round_up(K, 256))
    Mp, Np, Kp = _round_up(M, tm), _round_up(N, tn), _round_up(K, tk)
    # Only K padding is required for correctness (zero columns contribute 0).
    # TODO(synk): masked boundary blocks (cdiv grid) would avoid the M/N pad copies.
    x_p = x2d if (Mp, Kp) == (M, K) else jnp.pad(x2d, ((0, Mp - M), (0, Kp - K)))
    w_p = w_t if (Kp, Np) == (K, N) else jnp.pad(w_t, ((0, Kp - K), (0, Np - N)))
    b_p = b2d if Np == N else jnp.pad(b2d, ((0, 0), (0, Np - N)))

    gm, gn, gk = Mp // tm, Np // tn, Kp // tk
    direct_f32 = jnp.dtype(out_dtype) == jnp.dtype(jnp.float32)
    kernel = _tiled_kernel_f32 if direct_f32 else _tiled_kernel_acc
    scratch = [] if direct_f32 else [pltpu.VMEM((tm, tn), jnp.float32)]

    # Bytes reflect the actual re-streaming of this schedule:
    # x is read gn times, the weight gm times, the output written once.
    bytes_accessed = (Mp * Kp * in_bytes * gn + Kp * Np * in_bytes * gm
                      + Mp * Np * out_bytes + Np * bias_bytes)
    footprint = (2 * tm * tk * in_bytes + 2 * tk * tn * in_bytes
                 + 2 * tm * tn * out_bytes + (0 if direct_f32 else tm * tn * 4))

    out_p = pl.pallas_call(
        kernel,
        out_shape=jax.ShapeDtypeStruct((Mp, Np), out_dtype),
        grid_spec=pltpu.PrefetchScalarGridSpec(
            num_scalar_prefetch=0,
            grid=(gm, gn, gk),
            in_specs=[
                pl.BlockSpec((tm, tk), lambda i, j, k: (i, k)),   # x tile
                pl.BlockSpec((tk, tn), lambda i, j, k: (k, j)),   # weight^T tile
                pl.BlockSpec((1, tn), lambda i, j, k: (0, j)),    # bias tile
            ],
            out_specs=pl.BlockSpec((tm, tn), lambda i, j, k: (i, j)),
            scratch_shapes=scratch,
        ),
        compiler_params=pltpu.CompilerParams(
            dimension_semantics=("parallel", "parallel", "arbitrary"),
            vmem_limit_bytes=min(56 * 1024 * 1024,
                                 max(32 * 1024 * 1024, 2 * footprint))),
        cost_estimate=pl.CostEstimate(
            flops=2 * Mp * Np * Kp,
            bytes_accessed=bytes_accessed,
            transcendentals=0),
    )(x_p, w_p, b_p)
    return out_p[:M, :N] if (Mp, Np) != (M, N) else out_p


def my_network_linear_forward(d: dict, weight: jax.Array, bias: jax.Array) -> jax.Array:
    """Mirrors MyNetworkLinear.forward: Linear on last dim, then flatten(start_dim=1)."""
    x = d["inp"]                                        # (B, ..., in_features)
    B = x.shape[0]
    in_features = x.shape[-1]
    x2d = x.reshape(-1, in_features)                    # (prod(leading), in)
    y2d = pallas_linear(x2d, weight, bias)              # (prod(leading), out)
    y = y2d.reshape(x.shape[:-1] + (weight.shape[0],))  # (B, ..., out)
    return y.reshape(B, -1)                             # torch.flatten(y, start_dim=1)


def init_params(key: jax.Array, in_features: int, out_features: int):
    # Deterministic emulation of the module's reset_parameters:
    #   kaiming_uniform_(weight, a=sqrt(5)) -> U(-1/sqrt(fan_in), 1/sqrt(fan_in))
    #   bias ~ U(-fan_in**-0.5, fan_in**-0.5)
    kw, kb = jax.random.split(key)
    fan_in = in_features
    w_bound = math.sqrt(6.0 / ((1.0 + 5.0) * fan_in))   # = 1/sqrt(fan_in)
    b_bound = fan_in ** -0.5
    weight = jax.random.uniform(kw, (out_features, in_features),
                                jnp.float32, -w_bound, w_bound)
    bias = jax.random.uniform(kb, (out_features,), jnp.float32, -b_bound, b_bound)
    return weight, bias


if __name__ == "__main__":
    key = jax.random.PRNGKey(0)
    k_x, k_p = jax.random.split(key)

    # Small shapes consistent with the module's forward (Linear over last dim).
    B, S, in_features, out_features = 2, 8, 32, 16
    x = jax.random.normal(k_x, (B, S, in_features), jnp.float32)
    weight, bias = init_params(k_p, in_features, out_features)

    fwd = jax.jit(my_network_linear_forward)
    y = fwd({"inp": x}, weight, bias)
    jax.block_until_ready(y)

    # Sanity check against a plain-JAX reference.  Tolerance allows for the MXU's
    # default-precision f32 matmul path differing slightly from XLA's reference dot.
    ref = (x @ weight.T + bias).reshape(B, -1)
    assert y.shape == (B, S * out_features), y.shape
    assert jnp.allclose(y, ref, atol=2e-2, rtol=2e-2), float(jnp.max(jnp.abs(y - ref)))

    print("KERNEL_OK")
</pallas_src>

<mosaic_0001>
module attributes {stable_mosaic.version = 11 : i64} {
  func.func @_resident_kernel(%arg0: i32, %arg1: memref<8x32xf32, #tpu.memory_space<vmem>>, %arg2: memref<32x16xf32, #tpu.memory_space<vmem>>, %arg3: memref<1x16xf32, #tpu.memory_space<vmem>>, %arg4: memref<8x16xf32, #tpu.memory_space<vmem>>) attributes {dimension_semantics = [#tpu.dimension_semantics<parallel>], iteration_bounds = array<i64: 2>, scalar_prefetch = 0 : i64, scratch_operands = 0 : i64, tpu.core_type = #tpu.core_type<tc>, window_params = [{transform_indices = @transform_0, window_bounds = array<i64: 8, 32>}, {pipeline_mode = #tpu.pipeline_mode<synchronous>, transform_indices = @transform_1, window_bounds = array<i64: 32, 16>}, {pipeline_mode = #tpu.pipeline_mode<synchronous>, transform_indices = @transform_2, window_bounds = array<i64: 1, 16>}, {transform_indices = @transform_3, window_bounds = array<i64: 8, 16>}]} {
    %c0 = arith.constant 0 : index
    %c0_0 = arith.constant 0 : index
    %0 = vector.load %arg1[%c0, %c0_0] : memref<8x32xf32, #tpu.memory_space<vmem>>, vector<8x32xf32>
    %c0_1 = arith.constant 0 : index
    %c0_2 = arith.constant 0 : index
    %1 = vector.load %arg2[%c0_1, %c0_2] : memref<32x16xf32, #tpu.memory_space<vmem>>, vector<32x16xf32>
    %cst = arith.constant dense<0.000000e+00> : vector<8x16xf32>
    %2 = tpu.matmul %0, %1, %cst {dimension_numbers = #tpu.dot_dimension_numbers<[1], [0], [0], [1], [0, 0, 1, 1], [], []>} : vector<8x32xf32>, vector<32x16xf32>, vector<8x16xf32> -> vector<8x16xf32>
    %c0_3 = arith.constant 0 : index
    %c0_4 = arith.constant 0 : index
    %3 = vector.load %arg3[%c0_3, %c0_4] : memref<1x16xf32, #tpu.memory_space<vmem>>, vector<1x16xf32>
    %4 = vector.broadcast %3 : vector<1x16xf32> to vector<8x16xf32>
    %5 = arith.addf %2, %4 : vector<8x16xf32>
    %c0_5 = arith.constant 0 : index
    %c0_6 = arith.constant 0 : index
    %6 = vector.load %arg4[%c0_5, %c0_6] : memref<8x16xf32, #tpu.memory_space<vmem>>, vector<8x16xf32>
    tpu.vector_store %arg4[%c0_5, %c0_6], %5 {strides = array<i32>} : memref<8x16xf32, #tpu.memory_space<vmem>>, vector<8x16xf32>,
    return
  }
  func.func @transform_0(%arg0: i32) -> (i32, i32) {
    %c0_i32 = arith.constant 0 : i32
    %c0_i32_0 = arith.constant 0 : i32
    return %arg0, %c0_i32 : i32, i32
  }
  func.func @transform_1(%arg0: i32) -> (i32, i32) {
    %c0_i32 = arith.constant 0 : i32
    %c0_i32_0 = arith.constant 0 : i32
    %c0_i32_1 = arith.constant 0 : i32
    return %c0_i32, %c0_i32_0 : i32, i32
  }
  func.func @transform_2(%arg0: i32) -> (i32, i32) {
    %c0_i32 = arith.constant 0 : i32
    %c0_i32_0 = arith.constant 0 : i32
    %c0_i32_1 = arith.constant 0 : i32
    return %c0_i32, %c0_i32_0 : i32, i32
  }
  func.func @transform_3(%arg0: i32) -> (i32, i32) {
    %c0_i32 = arith.constant 0 : i32
    %c0_i32_0 = arith.constant 0 : i32
    return %arg0, %c0_i32 : i32, i32
  }
}

</mosaic_0001>

<bundles_post_ra>
// kernel: my_network_linear_forward.1
= control target key start
LH: loop header
LB: loop body
LE: loop exit
PB: predicated region body
PF: predicated region fallthrough
CT: control target
= control target key end

     0   :  { %s382_s12 = smov 0   ;;  %s414_s0 = inlined_call_operand.vmem [shape: f32[16,32], index: 0, kind: input, shape index: {}]   ;;  %s415_s1 = inlined_call_operand.vmem [shape: f32[32,16], index: 1, kind: input, shape index: {}]   ;;  %s416_s2 = inlined_call_operand.vmem [shape: f32[1,16], index: 2, kind: input, shape index: {}]   ;;  %s417_s3 = inlined_call_operand.vmem [shape: f32[16,16], index: 3, kind: output, shape index: {}]  }
   0x1 LB: > { %s307_s13 = sadd.s32 4294967295, %s357_s12   ;;  %p311_p0 = scmp.ge.s32.totalorder %s357_s12, 1  ;;  %s357_s12 = sphi %s382_s12, %s13_s12  }
   0x2   : > { %p136_p1 = scmp.lt.s32.totalorder %s357_s12, 3 }
   0x4   : > { %p137_p2 = pnand %p311_p0, %p136_p1 }
   0x5   : > { %v167_v0 = vld [vmem:[%s415_s1] sm:$0xff] (!%p137_p2)  ;;  %v168_v1 = vld [vmem:[%s415_s1 + $0x8] sm:$0xff] (!%p137_p2)  ;;  %v169_v2 = vld [vmem:[%s415_s1 + $0x10] sm:$0xff] (!%p137_p2)  ;;  %v359_v3 = vmov (!%p137_p2), 0.0|0.0   ;;  %vm360_vm0 = vmmov (!%p137_p2), 0   ;;  %v361_v6 = vmov (!%p137_p2), 0.0  }
   0x6   : > { %140 = sbr.rel (%p137_p2) target bundleno = 232 (0xe8), region = 32  ;;  %334 = vmatprep.subr.bf16.mxu0 (!%p137_p2), %v359_v3  ;;  %v335_v4 = vpack.c.bf16 (!%p137_p2), %v168_v1, %v167_v0  ;;  %v170_v5 = vld [vmem:[%s415_s1 + $0x18] sm:$0xff] (!%p137_p2)  ;;  %331 = vmatprep.mubr.msk.f32.mxu0 (!%p137_p2), %vm360_vm0, %v361_v6  ;;  %p158_p3 = scmp.lt.s32.totalorder (!%p137_p2), %s307_s13, 1  ;;  %vm178_vm1 = vcmask (!%p137_p2), 261120   ;;  %v314_v9 = vld [vmem:[%s416_s2] ss:$0 sm:$0xff] (!%p137_p2) }
   0x7   : > { %v338_v7 = vpack.c.bf16 (!%p137_p2), %v170_v5, %v169_v2  ;;  %vm252_vm2 = vcmask (!%p137_p2), 130048  }
   0x8   : > { %336 = vmatpush3.bf16.msra.mxu0 (!%p137_p2), %v335_v4 }
   0x9   : > { %337 = vmatprep.subr.bf16.mxu0 (!%p137_p2), %v359_v3 }
   0xc   : > { %339 = vmatpush3.bf16.msra.mxu0 (!%p137_p2), %v338_v7 }
   0xd   : > { %s419_s13 = smov (!%p158_p3, %s307_s13), 1 }
   0xe   : > { %s312_s22 = sshll.u32 %s419_s13, 3 }
   0xf   : > { %s161_s25 = scalar_lea.vmem %s414_s0, %s312_s22  ;;  %s165_s30 = scalar_lea.vmem %s417_s3, %s312_s22 }
  0x10   : > { %v166_v8 = vld [vmem:[%s161_s25] sm:$0xff] }
  0x11   : > { %332 = vmatmul.mubr.msk.f32.vlgmr.msra.gmra.mrb[0].mxu0 %vm178_vm1, %v166_v8 }
  0xe4   : > { %v248_v10 = vpop.f32.mrb[0].mxu0 }
  0xe5   : > { %v249_v11 = vadd.f32 %v314_v9, %v248_v10  ;;  %v333_v12 = vpop.f32.mrb[1].mxu0 }
  0xe7   : > { %253 = vst.msk [vmem:[%s165_s30] sm:$0xff] %vm252_vm2, %v249_v11 }
  0xe8 PF: > { %s13_s12 = sadd.s32 1, %s357_s12  }
  0xe9   : > { %p10_p4 = scmp.ge.s32.totalorder %s13_s12, 4  }
  0xeb   :  { %12 = sbr.rel (!%p10_p4) target bundleno = 1 (0x1), region = 62 }

</bundles_post_ra>
